<compile_context>
chip_gen: v7x
topology: tpu7x:2x2x1
jax: 0.10.0
libtpu: 0.0.40
codegen_flags: <defaults>
</compile_context>

<pallas_src>
import jax
import jax.numpy as jnp
import numpy as np
from jax.experimental import pallas as pl
from jax.experimental.pallas import tpu as pltpu

H, W = 5, 10
C_IN, C_OUT = 2, 128
KH = KW = 3
K = C_IN * KH * KW        # 18
EPS = 1e-5
TM_MAX = 2048             # rows of M per tile (multiple of 8 and of 128).
                          # VMEM @ TM=2048: 2*(x 0.5 MiB + out 1 MiB) ~ 3 MiB,
                          # far under the scoped default on v5e/v6e/v7x.


def conv_bn_relu_kernel(x_ref, w_ref, sb_ref, o_ref):
    # x_ref: (TM, K) bf16 | w_ref: (K, 128) bf16 | sb_ref: (2, 128) f32
    # o_ref: (TM, 128) f32.  Fused MXU matmul (f32 accumulate) + BN affine + ReLU.
    acc = jnp.dot(x_ref[...], w_ref[...], preferred_element_type=jnp.float32)
    y = acc * sb_ref[0:1, :] + sb_ref[1:2, :]          # folded BN, f32 epilogue
    o_ref[...] = jnp.maximum(y, 0.0).astype(o_ref.dtype)


def _im2col(x_nchw):
    # (N, C_IN, H, W), pad=1, 3x3 window -> (N*H*W, 18) with k = c*9 + dy*3 + dx.
    # Runs inside the same jit as the kernel, so XLA fuses this chain into a
    # single materialization of the bf16 patches array.
    n = x_nchw.shape[0]
    xp = jnp.pad(x_nchw, ((0, 0), (0, 0), (1, 1), (1, 1)))
    cols = []
    for dy in range(KH):
        for dx in range(KW):
            cols.append(xp[:, :, dy:dy + H, dx:dx + W])        # (N, C_IN, H, W)
    patches = jnp.stack(cols, axis=2)                           # (N, C_IN, 9, H, W)
    patches = patches.transpose(0, 3, 4, 1, 2)                  # (N, H, W, C_IN, 9)
    return patches.reshape(n * H * W, K)


def init_params(key):
    k1, k2, k3, k4, k5, k6 = jax.random.split(key, 6)
    return {
        "conv_w": jax.random.normal(k1, (C_OUT, C_IN, KH, KW), jnp.float32) * 0.1,
        "conv_b": jax.random.normal(k2, (C_OUT,), jnp.float32) * 0.1,
        "bn_gamma": 1.0 + 0.1 * jax.random.normal(k3, (C_OUT,), jnp.float32),
        "bn_beta": 0.1 * jax.random.normal(k4, (C_OUT,), jnp.float32),
        "bn_mean": 0.1 * jax.random.normal(k5, (C_OUT,), jnp.float32),
        "bn_var": jnp.abs(jax.random.normal(k6, (C_OUT,), jnp.float32)) + 0.5,
    }


def conv_block_forward(s, params, nchw=False):
    """ConvBlock.forward.  Default output is channels-last (N, H, W, 128);
    pass nchw=True for the exact PyTorch (N, 128, H, W) layout."""
    x = s.reshape(-1, C_IN, H, W).astype(jnp.bfloat16)          # s.view(-1, 2, 5, 10)
    n = x.shape[0]
    m = n * H * W

    patches = _im2col(x)                                        # (M, 18) bf16
    w2d = params["conv_w"].reshape(C_OUT, K).T.astype(jnp.bfloat16)   # (18, 128) bf16

    # Fold eval-mode BN + conv bias into a single (2, 128) scale/bias operand.
    inv_std = params["bn_gamma"] / jnp.sqrt(params["bn_var"] + EPS)
    bias = (params["conv_b"] - params["bn_mean"]) * inv_std + params["bn_beta"]
    sb = jnp.stack([inv_std, bias], axis=0).astype(jnp.float32)        # (2, 128)

    tm = m if m <= TM_MAX else TM_MAX                            # full-dim or aligned tile
    grid = (pl.cdiv(m, tm),)

    out2d = pl.pallas_call(
        conv_bn_relu_kernel,
        out_shape=jax.ShapeDtypeStruct((m, C_OUT), jnp.float32),
        grid=grid,
        in_specs=[
            pl.BlockSpec((tm, K), lambda i: (i, 0)),             # streamed over M
            pl.BlockSpec((K, C_OUT), lambda i: (0, 0)),          # weights resident
            pl.BlockSpec((2, C_OUT), lambda i: (0, 0)),          # BN scale/bias resident
        ],
        out_specs=pl.BlockSpec((tm, C_OUT), lambda i: (i, 0)),
        compiler_params=pltpu.CompilerParams(
            dimension_semantics=("parallel",),                   # v7x: 2 TCs split M
        ),
    )(patches, w2d, sb)

    out = out2d.reshape(n, H, W, C_OUT)                          # NHWC, lane-dense
    if nchw:
        out = out.transpose(0, 3, 1, 2)                          # only if caller needs NCHW
    return out


def reference_forward(s, params):
    # Pure-JAX f32 reference (conv -> eval-mode BN -> ReLU), NCHW.
    x = s.reshape(-1, C_IN, H, W)
    y = jax.lax.conv_general_dilated(
        x, params["conv_w"], window_strides=(1, 1), padding=((1, 1), (1, 1)),
        dimension_numbers=("NCHW", "OIHW", "NCHW"))
    y = y + params["conv_b"].reshape(1, C_OUT, 1, 1)
    inv_std = (params["bn_gamma"] / jnp.sqrt(params["bn_var"] + EPS)).reshape(1, C_OUT, 1, 1)
    y = (y - params["bn_mean"].reshape(1, C_OUT, 1, 1)) * inv_std \
        + params["bn_beta"].reshape(1, C_OUT, 1, 1)
    return jnp.maximum(y, 0.0)


if __name__ == "__main__":
    key = jax.random.PRNGKey(0)
    pkey, xkey = jax.random.split(key)
    params = init_params(pkey)

    fwd = jax.jit(conv_block_forward, static_argnames=("nchw",))

    # Batch of 2 flattened boards; forward views them as (2, 2, 5, 10).
    s = jax.random.normal(xkey, (2, C_IN * H * W), jnp.float32)
    ref = jax.block_until_ready(reference_forward(s, params))

    # Channels-last (default) output; bf16 matmul inputs -> loose tolerance.
    out = jax.block_until_ready(fwd(s, params))
    assert out.shape == (2, H, W, C_OUT), out.shape
    np.testing.assert_allclose(np.asarray(out),
                               np.asarray(ref.transpose(0, 2, 3, 1)),
                               rtol=2e-2, atol=2e-2)

    # Exact PyTorch NCHW layout (semantics of the original module).
    out_nchw = jax.block_until_ready(fwd(s, params, nchw=True))
    assert out_nchw.shape == (2, C_OUT, H, W), out_nchw.shape
    np.testing.assert_allclose(np.asarray(out_nchw), np.asarray(ref),
                               rtol=2e-2, atol=2e-2)

    # Larger batch exercises the M grid (multiple tiles + ragged final tile).
    s_big = jax.random.normal(jax.random.PRNGKey(1), (64, C_IN * H * W), jnp.float32)
    out_big = jax.block_until_ready(fwd(s_big, params))
    ref_big = jax.block_until_ready(reference_forward(s_big, params))
    np.testing.assert_allclose(np.asarray(out_big),
                               np.asarray(ref_big.transpose(0, 2, 3, 1)),
                               rtol=2e-2, atol=2e-2)

    print("KERNEL_OK")
</pallas_src>

<mosaic_0001>
module attributes {stable_mosaic.version = 11 : i64} {
  func.func @conv_bn_relu_kernel(%arg0: i32, %arg1: memref<100x18xbf16, #tpu.memory_space<vmem>>, %arg2: memref<18x128xbf16, #tpu.memory_space<vmem>>, %arg3: memref<2x128xf32, #tpu.memory_space<vmem>>, %arg4: memref<100x128xf32, #tpu.memory_space<vmem>>) attributes {dimension_semantics = [#tpu.dimension_semantics<parallel>], iteration_bounds = array<i64: 1>, scalar_prefetch = 0 : i64, scratch_operands = 0 : i64, tpu.core_type = #tpu.core_type<tc>, window_params = [{transform_indices = @transform_0, window_bounds = array<i64: 100, 18>}, {pipeline_mode = #tpu.pipeline_mode<synchronous>, transform_indices = @transform_1, window_bounds = array<i64: 18, 128>}, {pipeline_mode = #tpu.pipeline_mode<synchronous>, transform_indices = @transform_2, window_bounds = array<i64: 2, 128>}, {transform_indices = @transform_3, window_bounds = array<i64: 100, 128>}]} {
    %c0 = arith.constant 0 : index
    %c0_0 = arith.constant 0 : index
    %0 = vector.load %arg1[%c0, %c0_0] : memref<100x18xbf16, #tpu.memory_space<vmem>>, vector<100x18xbf16>
    %c0_1 = arith.constant 0 : index
    %c0_2 = arith.constant 0 : index
    %1 = vector.load %arg2[%c0_1, %c0_2] : memref<18x128xbf16, #tpu.memory_space<vmem>>, vector<18x128xbf16>
    %cst = arith.constant dense<0.000000e+00> : vector<100x128xf32>
    %2 = tpu.matmul %0, %1, %cst {dimension_numbers = #tpu.dot_dimension_numbers<[1], [0], [0], [1], [0, 0, 1, 1], [], []>} : vector<100x18xbf16>, vector<18x128xbf16>, vector<100x128xf32> -> vector<100x128xf32>
    %c0_3 = arith.constant 0 : index
    %c0_4 = arith.constant 0 : index
    %3 = vector.load %arg3[%c0_3, %c0_4] : memref<2x128xf32, #tpu.memory_space<vmem>>, vector<1x128xf32>
    %4 = vector.broadcast %3 : vector<1x128xf32> to vector<100x128xf32>
    %5 = arith.mulf %2, %4 : vector<100x128xf32>
    %c1 = arith.constant 1 : index
    %c0_5 = arith.constant 0 : index
    %6 = vector.load %arg3[%c1, %c0_5] : memref<2x128xf32, #tpu.memory_space<vmem>>, vector<1x128xf32>
    %7 = vector.broadcast %6 : vector<1x128xf32> to vector<100x128xf32>
    %8 = arith.addf %5, %7 : vector<100x128xf32>
    %cst_6 = arith.constant 0.000000e+00 : f32
    %9 = vector.broadcast %cst_6 : f32 to vector<100x128xf32>
    %10 = arith.maximumf %8, %9 : vector<100x128xf32>
    %c0_7 = arith.constant 0 : index
    %c0_8 = arith.constant 0 : index
    %11 = vector.load %arg4[%c0_7, %c0_8] : memref<100x128xf32, #tpu.memory_space<vmem>>, vector<100x128xf32>
    tpu.vector_store %arg4[%c0_7, %c0_8], %10 {strides = array<i32>} : memref<100x128xf32, #tpu.memory_space<vmem>>, vector<100x128xf32>,
    return
  }
  func.func @transform_0(%arg0: i32) -> (i32, i32) {
    %c0_i32 = arith.constant 0 : i32
    %c0_i32_0 = arith.constant 0 : i32
    return %arg0, %c0_i32 : i32, i32
  }
  func.func @transform_1(%arg0: i32) -> (i32, i32) {
    %c0_i32 = arith.constant 0 : i32
    %c0_i32_0 = arith.constant 0 : i32
    %c0_i32_1 = arith.constant 0 : i32
    return %c0_i32, %c0_i32_0 : i32, i32
  }
  func.func @transform_2(%arg0: i32) -> (i32, i32) {
    %c0_i32 = arith.constant 0 : i32
    %c0_i32_0 = arith.constant 0 : i32
    %c0_i32_1 = arith.constant 0 : i32
    return %c0_i32, %c0_i32_0 : i32, i32
  }
  func.func @transform_3(%arg0: i32) -> (i32, i32) {
    %c0_i32 = arith.constant 0 : i32
    %c0_i32_0 = arith.constant 0 : i32
    return %arg0, %c0_i32 : i32, i32
  }
}

</mosaic_0001>

<bundles_post_ra>
// kernel: conv_block_forward.1
= control target key start
LH: loop header
LB: loop body
LE: loop exit
PB: predicated region body
PF: predicated region fallthrough
CT: control target
= control target key end

     0   :  { %v327_v0 = vmov 0.0   ;;  %vm95_vm0 = vcmask 1040384   ;;  %vm328_vm1 = vmmov 0   ;;  %vm73_vm2 = vcmask 146432   ;;  %s465_s1 = inlined_call_operand.vmem [shape: bf16[18,128], index: 1, kind: input, shape index: {}]   ;;  %s466_s0 = inlined_call_operand.vmem [shape: bf16[100,18], index: 0, kind: input, shape index: {}]   ;;  %s467_s2 = inlined_call_operand.vmem [shape: f32[2,128], index: 2, kind: input, shape index: {}]   ;;  %s468_s3 = inlined_call_operand.vmem [shape: f32[100,128], index: 3, kind: output, shape index: {}]  }
   0x1   :  { %280 = vmatprep.subr.bf16.mxu0 %v327_v0  ;;  %v318_v1 = vld [vmem:[%s465_s1] sm:$0xff]   ;;  %312 = vmatprep.subr.bf16.mxu1 %v327_v0  ;;  %v319_v2 = vld [vmem:[%s465_s1 + $0x8] ss:$0 sps:$4 sm:$0x11]   ;;  %v324_v8 = vld [vmem:[%s466_s0 + $0x10] sm:$0xff]  }
   0x2   :  { %284 = vmatprep.mubr.msk.bf16.mxu0 %vm328_vm1, %v327_v0  ;;  %300 = vmatprep.mubr.msk.bf16.mxu1 %vm328_vm1, %v327_v0  ;;  %v97_v3 = vsel %vm95_vm0, %v319_v2, 0  ;;  %v320_v4 = vld [vmem:[%s466_s0] sm:$0xff]   ;;  %v322_v6 = vld [vmem:[%s466_s0 + $0x8] sm:$0xff]   ;;  %v325_v9 = vld [vmem:[%s466_s0 + $0x30] ss:$0 sps:$4 sm:$0x33]  }
   0x3   :  { %281 = vmatpush3.bf16.msra.mxu0 %v318_v1  ;;  %314 = vmatpush3.bf16.msra.mxu1 %v318_v1  ;;  %v321_v5 = vld [vmem:[%s466_s0 + $0x20] sm:$0xff]   ;;  %v323_v7 = vld [vmem:[%s466_s0 + $0x28] sm:$0xff]   ;;  %v326_v10 = vld [vmem:[%s466_s0 + $0x18] sm:$0xff]  }
   0x4   :  { %282 = vmatprep.subr.bf16.mxu0 %v327_v0  ;;  %313 = vmatprep.subr.bf16.mxu1 %v327_v0  ;;  %v393_v11 = vld [vmem:[%s467_s2] ss:$0 sm:$0xff]  ;;  %v398_v13 = vld [vmem:[%s467_s2 + $0x1] ss:$0 sm:$0xff] }
   0x7   :  { %283 = vmatpush3.bf16.msra.mxu0 %v97_v3  ;;  %315 = vmatpush3.bf16.msra.mxu1 %v97_v3 }
   0xa   :  { %285 = vmatmul.mubr.msk.bf16.vlgmr.msra.gmra.mrb[0].mxu0 %vm73_vm2, %v320_v4  ;;  %301 = vmatmul.mubr.msk.bf16.vlgmr.msra.gmra.mrb[0].mxu1 %vm73_vm2, %v321_v5 }
   0xb   :  { %288 = vmatprep.mubr.msk.bf16.mxu0 %vm328_vm1, %v327_v0  ;;  %304 = vmatprep.mubr.msk.bf16.mxu1 %vm328_vm1, %v327_v0 }
  0x12   :  { %289 = vmatmul.mubr.msk.bf16.gmra.mrb[4].mxu0 %vm73_vm2, %v322_v6  ;;  %305 = vmatmul.mubr.msk.bf16.gmra.mrb[4].mxu1 %vm73_vm2, %v323_v7 }
  0x13   :  { %292 = vmatprep.mubr.msk.bf16.mxu0 %vm328_vm1, %v327_v0  ;;  %308 = vmatprep.mubr.msk.bf16.mxu1 %vm328_vm1, %v327_v0 }
  0x1a   :  { %293 = vmatmul.mubr.msk.bf16.gmra.mrb[8].mxu0 %vm73_vm2, %v324_v8  ;;  %309 = vmatmul.mubr.msk.bf16.gmra.mrb[8].mxu1 %vm73_vm2, %v325_v9 }
  0x1b   :  { %296 = vmatprep.mubr.msk.bf16.mxu0 %vm328_vm1, %v327_v0 }
  0x22   :  { %297 = vmatmul.mubr.msk.bf16.gmra.mrb[12].mxu0 %vm73_vm2, %v326_v10 }
  0xdd   :  { %v133_v12 = vpop.f32.mrb[0].mxu0  ;;  %v165_v14 = vpop.f32.mrb[0].mxu1 }
  0xde   :  { %v192_v15 = vmul.f32 %v393_v11, %v133_v12  ;;  %v286_v16 = vpop.f32.mrb[1].mxu0  ;;  %v200_v17 = vmul.f32 %v393_v11, %v165_v14  ;;  %v302_v18 = vpop.f32.mrb[1].mxu1 }
  0xdf   :  { %v136_v19 = vpop.f32.mrb[2].mxu0  ;;  %v168_v20 = vpop.f32.mrb[2].mxu1 }
  0xe0   :  { %v210_v21 = vadd.f32 %v398_v13, %v192_v15  ;;  %v193_v22 = vmul.f32 %v393_v11, %v136_v19  ;;  %v287_v23 = vpop.f32.mrb[3].mxu0  ;;  %v218_v24 = vadd.f32 %v398_v13, %v200_v17  ;;  %v201_v25 = vmul.f32 %v393_v11, %v168_v20  ;;  %v303_v26 = vpop.f32.mrb[3].mxu1 }
  0xe2   :  { %v223_v27 = vmax.f32 %v210_v21, 0.0  ;;  %v211_v28 = vadd.f32 %v398_v13, %v193_v22  ;;  %v231_v29 = vmax.f32 %v218_v24, 0.0  ;;  %v219_v30 = vadd.f32 %v398_v13, %v201_v25 }
  0xe4   :  { %236 = vst [vmem:[%s468_s3] sm:$0xff] %v223_v27  ;;  %v224_v31 = vmax.f32 %v211_v28, 0.0  ;;  %244 = vst [vmem:[%s468_s3 + $0x40] sm:$0xff] %v231_v29  ;;  %v232_v32 = vmax.f32 %v219_v30, 0.0 }
  0xe5   :  { %v141_v33 = vpop.f32.mrb[4].mxu0  ;;  %v173_v34 = vpop.f32.mrb[4].mxu1 }
  0xe6   :  { %237 = vst [vmem:[%s468_s3 + $0x8] sm:$0xff] %v224_v31  ;;  %v194_v35 = vmul.f32 %v393_v11, %v141_v33  ;;  %v290_v36 = vpop.f32.mrb[5].mxu0  ;;  %245 = vst [vmem:[%s468_s3 + $0x48] sm:$0xff] %v232_v32  ;;  %v202_v37 = vmul.f32 %v393_v11, %v173_v34  ;;  %v306_v38 = vpop.f32.mrb[5].mxu1 }
  0xe7   :  { %v144_v39 = vpop.f32.mrb[6].mxu0  ;;  %v176_v40 = vpop.f32.mrb[6].mxu1 }
  0xe8   :  { %v212_v41 = vadd.f32 %v398_v13, %v194_v35  ;;  %v195_v42 = vmul.f32 %v393_v11, %v144_v39  ;;  %v291_v43 = vpop.f32.mrb[7].mxu0  ;;  %v220_v44 = vadd.f32 %v398_v13, %v202_v37  ;;  %v203_v45 = vmul.f32 %v393_v11, %v176_v40  ;;  %v307_v46 = vpop.f32.mrb[7].mxu1 }
  0xea   :  { %v225_v47 = vmax.f32 %v212_v41, 0.0  ;;  %v213_v48 = vadd.f32 %v398_v13, %v195_v42  ;;  %v233_v49 = vmax.f32 %v220_v44, 0.0  ;;  %v221_v50 = vadd.f32 %v398_v13, %v203_v45 }
  0xec   :  { %238 = vst [vmem:[%s468_s3 + $0x10] sm:$0xff] %v225_v47  ;;  %v226_v51 = vmax.f32 %v213_v48, 0.0  ;;  %246 = vst [vmem:[%s468_s3 + $0x50] sm:$0xff] %v233_v49  ;;  %v234_v52 = vmax.f32 %v221_v50, 0.0 }
  0xed   :  { %v149_v53 = vpop.f32.mrb[8].mxu0  ;;  %v181_v54 = vpop.f32.mrb[8].mxu1 }
  0xee   :  { %239 = vst [vmem:[%s468_s3 + $0x18] sm:$0xff] %v226_v51  ;;  %v196_v55 = vmul.f32 %v393_v11, %v149_v53  ;;  %v294_v56 = vpop.f32.mrb[9].mxu0  ;;  %247 = vst [vmem:[%s468_s3 + $0x58] sm:$0xff] %v234_v52  ;;  %v204_v57 = vmul.f32 %v393_v11, %v181_v54  ;;  %v310_v58 = vpop.f32.mrb[9].mxu1 }
  0xef   :  { %v152_v59 = vpop.f32.mrb[10].mxu0  ;;  %v184_v60 = vpop.f32.mrb[10].mxu1 }
  0xf0   :  { %v214_v61 = vadd.f32 %v398_v13, %v196_v55  ;;  %v197_v62 = vmul.f32 %v393_v11, %v152_v59  ;;  %v295_v63 = vpop.f32.mrb[11].mxu0  ;;  %v222_v0 = vadd.f32 %v398_v13, %v204_v57  ;;  %v311_v1 = vpop.f32.mrb[11].mxu1 }
  0xf2   :  { %v227_v2 = vmax.f32 %v214_v61, 0.0  ;;  %v215_v3 = vadd.f32 %v398_v13, %v197_v62  ;;  %v235_v4 = vmax.f32 %v222_v0, 0.0 }
  0xf4   :  { %240 = vst [vmem:[%s468_s3 + $0x20] sm:$0xff] %v227_v2  ;;  %v228_v5 = vmax.f32 %v215_v3, 0.0  ;;  %248 = vst [vmem:[%s468_s3 + $0x60] sm:$0xf] %v235_v4 }
  0xf5   :  { %v157_v6 = vpop.f32.mrb[12].mxu0 }
  0xf6   :  { %241 = vst [vmem:[%s468_s3 + $0x28] sm:$0xff] %v228_v5  ;;  %v198_v7 = vmul.f32 %v393_v11, %v157_v6  ;;  %v298_v8 = vpop.f32.mrb[13].mxu0 }
  0xf7   :  { %v160_v9 = vpop.f32.mrb[14].mxu0 }
  0xf8   :  { %v216_v10 = vadd.f32 %v398_v13, %v198_v7  ;;  %v199_v12 = vmul.f32 %v393_v11, %v160_v9  ;;  %v299_v14 = vpop.f32.mrb[15].mxu0 }
  0xfa   :  { %v229_v15 = vmax.f32 %v216_v10, 0.0  ;;  %v217_v16 = vadd.f32 %v398_v13, %v199_v12 }
  0xfc   :  { %242 = vst [vmem:[%s468_s3 + $0x30] sm:$0xff] %v229_v15  ;;  %v230_v17 = vmax.f32 %v217_v16, 0.0 }
  0xfe   :  { %243 = vst [vmem:[%s468_s3 + $0x38] sm:$0xff] %v230_v17 }

</bundles_post_ra>
